<compile_context>
chip_gen: v5e
topology: v5e:2x2
jax: 0.10.0
libtpu: 0.0.40
codegen_flags: <defaults>
</compile_context>

<pallas_src>
import jax
import jax.numpy as jnp
from jax.experimental import pallas as pl
from jax.experimental.pallas import tpu as pltpu


# ----------------------------------------------------------------------------
# Kernel bodies
# ----------------------------------------------------------------------------
def _body(x_ref, w_ref, b_ref, m_ref, out_ref, wts_ref):
    # x_ref:   (TB, S, D) VMEM input slab, native dtype
    # w_ref:   (1, D)     VMEM projection weight row (f32, lane-dense)
    # b_ref:   (1,)       SMEM projection bias (f32 scalar)
    # m_ref:   (TB, S)    VMEM 32-bit mask (0 => masked out), or None
    # out_ref: (TB, D)    pooled outputs (lane-dense D)
    # wts_ref: (TB, S)    attention weights (lane-dense S)
    x = x_ref[...]                                   # native dtype; upcasts fuse per-use
    w = w_ref[...].astype(jnp.float32)               # (1, D)
    b = b_ref[0]                                     # f32 scalar from SMEM

    # Linear(D, 1) over the feature (lane) axis on the VPU/XLU, f32 accumulate.
    scores = jnp.sum(x * w[None, :, :], axis=-1) + b          # (TB, S) f32

    if m_ref is not None:
        # masked_fill(mask == 0, -inf); fully-masked rows -> NaN (torch parity).
        scores = jnp.where(m_ref[...] == 0, -jnp.inf, scores)

    # Row softmax along the sequence (lane) axis.
    s_max = jnp.max(scores, axis=-1, keepdims=True)            # (TB, 1)
    e = jnp.exp(scores - s_max)                                # (TB, S)
    denom = jnp.sum(e, axis=-1, keepdims=True)                 # (TB, 1)
    weights = e / denom        # exact divide (approx reciprocal was ~1e-3 off)

    # Weighted pooling over the sequence: sum_s w_{b,s} * x_{b,s,:}.
    pooled = jnp.sum(x * weights[:, :, None], axis=1)          # (TB, D) f32

    out_ref[...] = pooled.astype(out_ref.dtype)
    wts_ref[...] = weights.astype(wts_ref.dtype)


def _kernel_masked(x_ref, w_ref, b_ref, m_ref, out_ref, wts_ref):
    _body(x_ref, w_ref, b_ref, m_ref, out_ref, wts_ref)


def _kernel_unmasked(x_ref, w_ref, b_ref, out_ref, wts_ref):
    _body(x_ref, w_ref, b_ref, None, out_ref, wts_ref)


# ----------------------------------------------------------------------------
# Tiling / VMEM budgeting helpers
# ----------------------------------------------------------------------------
def _round_up(x, m):
    return ((x + m - 1) // m) * m


def _sublane_multiple(dtype):
    # Full sublane packing: 8 for 4-byte, 16 for 2-byte, 32 for 1-byte dtypes.
    return max(8, 32 // max(1, jnp.dtype(dtype).itemsize))


def _vmem_capacity_bytes():
    try:
        return int(pltpu.get_tpu_info().vmem_capacity_bytes)
    except Exception:
        return 64 << 20  # conservative fallback: v7x per-TensorCore VMEM


def _per_row_vmem_bytes(S, D, x_itemsize, out_itemsize):
    # Live VMEM per batch row per grid step:
    #   2x double-buffered native x slab, ~3 (S,D)-sized f32 compute temps,
    #   2x double-buffered outputs, 32-bit mask row.
    return (2 * S * D * x_itemsize
            + 3 * S * D * 4
            + 2 * (S + D) * out_itemsize
            + 2 * S * 4)


def _pick_batch_tile(B, per_row_bytes, sublane, budget_bytes):
    """Largest sublane-aligned batch tile whose working set fits budget_bytes,
    capped so the grid has >= 2 steps whenever B can be split on aligned
    boundaries (v7x megacore + DMA/compute overlap)."""
    tb = max(1, budget_bytes // per_row_bytes)
    if tb >= B:
        tb = B
    else:
        tb = max(sublane, (tb // sublane) * sublane)
    if B >= 2 * sublane:
        tb = min(tb, _round_up(pl.cdiv(B, 2), sublane))
    # TODO(synk): if one sublane-aligned row slab still exceeds the VMEM budget
    # (huge S*D), tile S or D over a trailing "arbitrary" reduction axis
    # instead of only raising vmem_limit_bytes.
    return max(1, min(tb, B))


# ----------------------------------------------------------------------------
# Wrapper
# ----------------------------------------------------------------------------
def mask_attention_forward(inputs, weight, bias, mask=None, *, batch_tile=None):
    """Pallas implementation of _MaskAttentionLayer.forward.

    inputs: (B, S, D)   any float dtype (consumed natively, f32 accumulation)
    weight: (1, D)      torch Linear(D, 1).weight
    bias:   (1,)        torch Linear(D, 1).bias
    mask:   optional (B, S); entries equal to 0 are masked out.

    Returns (outputs (B, D), weights (B, 1, S)) matching the torch module.
    """
    B, S, D = inputs.shape
    out_dtype = inputs.dtype
    x_itemsize = jnp.dtype(inputs.dtype).itemsize
    out_itemsize = jnp.dtype(out_dtype).itemsize

    w_row = jnp.asarray(weight, jnp.float32).reshape(1, D)
    b_arr = jnp.asarray(bias, jnp.float32).reshape(1,)          # SMEM scalar

    sublane = _sublane_multiple(out_dtype)
    phys_vmem = _vmem_capacity_bytes()
    budget = min(32 << 20, max(8 << 20, phys_vmem // 4))
    per_row = _per_row_vmem_bytes(S, D, x_itemsize, out_itemsize)

    if batch_tile is None:
        tb = _pick_batch_tile(B, per_row, sublane, budget)
    else:
        tb = int(batch_tile)
    grid = (pl.cdiv(B, tb),)

    # Explicit scoped-VMEM limit sized to the real working set (v5e's default
    # scoped limit is only 16 MiB; v7x physical VMEM is 64 MiB).
    est = per_row * tb + 2 * D * 4 + (256 << 10)
    vmem_limit = int(min(max(16 << 20, int(1.5 * est)),
                         max(16 << 20, phys_vmem - (8 << 20))))

    x_spec = pl.BlockSpec((tb, S, D), lambda i: (i, 0, 0))
    w_spec = pl.BlockSpec((1, D), lambda i: (0, 0))
    b_spec = pl.BlockSpec(memory_space=pltpu.MemorySpace.SMEM)   # scalar path
    out_specs = (
        pl.BlockSpec((tb, D), lambda i: (i, 0)),    # pooled, lane-dense D
        pl.BlockSpec((tb, S), lambda i: (i, 0)),    # weights, lane-dense S
    )
    out_shape = (
        jax.ShapeDtypeStruct((B, D), out_dtype),
        jax.ShapeDtypeStruct((B, S), out_dtype),
    )
    cparams = pltpu.CompilerParams(
        dimension_semantics=("parallel",),
        vmem_limit_bytes=vmem_limit,
    )

    if mask is None:
        pooled, wts = pl.pallas_call(
            _kernel_unmasked,
            out_shape=out_shape,
            grid_spec=pltpu.PrefetchScalarGridSpec(
                num_scalar_prefetch=0,
                grid=grid,
                in_specs=[x_spec, w_spec, b_spec],
                out_specs=out_specs,
            ),
            compiler_params=cparams,
        )(inputs, w_row, b_arr)
    else:
        m = jnp.asarray(mask).reshape(B, S)
        if m.dtype.itemsize != 4:
            # Keep 32-bit so (tb, S) sub-blocks stay on the native (8, 128)
            # tiling; int32/float32 masks pass through with no convert pass.
            m = m.astype(jnp.int32)
        m_spec = pl.BlockSpec((tb, S), lambda i: (i, 0))
        pooled, wts = pl.pallas_call(
            _kernel_masked,
            out_shape=out_shape,
            grid_spec=pltpu.PrefetchScalarGridSpec(
                num_scalar_prefetch=0,
                grid=grid,
                in_specs=[x_spec, w_spec, b_spec, m_spec],
                out_specs=out_specs,
            ),
            compiler_params=cparams,
        )(inputs, w_row, b_arr, m)

    # (B, S) -> (B, 1, S): metadata-only reshape, no HBM transpose pass.
    return pooled, wts[:, None, :]


# ----------------------------------------------------------------------------
# Pure-JAX reference (f32 elementwise contractions; mirrors the torch math)
# ----------------------------------------------------------------------------
def _reference(inputs, weight, bias, mask=None):
    B, S, D = inputs.shape
    x32 = inputs.astype(jnp.float32)
    w32 = jnp.asarray(weight, jnp.float32).reshape(1, 1, D)
    b32 = jnp.asarray(bias, jnp.float32).reshape(())
    scores = jnp.sum(x32 * w32, axis=-1) + b32                  # (B, S)
    if mask is not None:
        scores = jnp.where(jnp.asarray(mask).reshape(B, S) == 0, -jnp.inf, scores)
    s_max = jnp.max(scores, axis=-1, keepdims=True)
    e = jnp.exp(scores - s_max)
    w = e / jnp.sum(e, axis=-1, keepdims=True)                  # (B, S)
    out = jnp.sum(x32 * w[:, :, None], axis=1)                  # (B, D)
    return out.astype(inputs.dtype), w[:, None, :].astype(inputs.dtype)


# ----------------------------------------------------------------------------
# Self-test
# ----------------------------------------------------------------------------
if __name__ == "__main__":
    key = jax.random.PRNGKey(0)
    k_x, k_w, k_b, k_x2 = jax.random.split(key, 4)

    B, S, D = 2, 8, 32
    x = jax.random.normal(k_x, (B, S, D), jnp.float32)
    weight = jax.random.normal(k_w, (1, D), jnp.float32) * 0.1   # Linear(D,1).weight
    bias = jax.random.normal(k_b, (1,), jnp.float32) * 0.1       # Linear(D,1).bias
    # Mask: first sample masks the last 3 positions, second sample unmasked.
    mask = jnp.ones((B, S), jnp.int32).at[0, -3:].set(0)

    atol = rtol = 5e-4

    out, wts = mask_attention_forward(x, weight, bias, mask)
    jax.block_until_ready((out, wts))
    ref_out, ref_wts = _reference(x, weight, bias, mask)
    assert out.shape == (B, D) and wts.shape == (B, 1, S)
    assert jnp.allclose(out, ref_out, atol=atol, rtol=rtol)
    assert jnp.allclose(wts, ref_wts, atol=atol, rtol=rtol)
    # Softmax rows sum to 1 with the exact divide.
    assert jnp.allclose(jnp.sum(wts, axis=-1), 1.0, atol=1e-5)

    # mask=None path.
    out2, wts2 = mask_attention_forward(x, weight, bias, None)
    jax.block_until_ready((out2, wts2))
    ref_out2, ref_wts2 = _reference(x, weight, bias, None)
    assert jnp.allclose(out2, ref_out2, atol=atol, rtol=rtol)
    assert jnp.allclose(wts2, ref_wts2, atol=atol, rtol=rtol)

    # Batch-tiled path: default picker splits B=16 into >=2 grid steps.
    B2 = 16
    x3 = jax.random.normal(k_x2, (B2, S, D), jnp.float32)
    mask3 = jnp.ones((B2, S), jnp.int32).at[:, -2:].set(0)
    out3, wts3 = mask_attention_forward(x3, weight, bias, mask3)
    jax.block_until_ready((out3, wts3))
    ref_out3, ref_wts3 = _reference(x3, weight, bias, mask3)
    assert jnp.allclose(out3, ref_out3, atol=atol, rtol=rtol)
    assert jnp.allclose(wts3, ref_wts3, atol=atol, rtol=rtol)

    # Explicit batch_tile override produces the same result.
    out4, wts4 = mask_attention_forward(x3, weight, bias, mask3, batch_tile=8)
    jax.block_until_ready((out4, wts4))
    assert jnp.allclose(out4, ref_out3, atol=atol, rtol=rtol)
    assert jnp.allclose(wts4, ref_wts3, atol=atol, rtol=rtol)

    print("KERNEL_OK")
</pallas_src>

<mosaic_0001>
module attributes {stable_mosaic.version = 11 : i64} {
  func.func @_kernel_masked(%arg0: i32, %arg1: memref<2x8x32xf32, #tpu.memory_space<vmem>>, %arg2: memref<1x32xf32, #tpu.memory_space<vmem>>, %arg3: memref<1xf32, #tpu.memory_space<smem>>, %arg4: memref<2x8xi32, #tpu.memory_space<vmem>>, %arg5: memref<2x32xf32, #tpu.memory_space<vmem>>, %arg6: memref<2x8xf32, #tpu.memory_space<vmem>>) attributes {dimension_semantics = [#tpu.dimension_semantics<parallel>], iteration_bounds = array<i64: 1>, scalar_prefetch = 0 : i64, scratch_operands = 0 : i64, tpu.core_type = #tpu.core_type<tc>, window_params = [{transform_indices = @transform_0, window_bounds = array<i64: 2, 8, 32>}, {pipeline_mode = #tpu.pipeline_mode<synchronous>, transform_indices = @transform_1, window_bounds = array<i64: 1, 32>}, {transform_indices = @transform_2, window_bounds = array<i64: 1>}, {transform_indices = @transform_3, window_bounds = array<i64: 2, 8>}, {transform_indices = @transform_4, window_bounds = array<i64: 2, 32>}, {transform_indices = @transform_5, window_bounds = array<i64: 2, 8>}]} {
    %c0 = arith.constant 0 : index
    %c0_0 = arith.constant 0 : index
    %c0_1 = arith.constant 0 : index
    %0 = vector.load %arg1[%c0, %c0_0, %c0_1] : memref<2x8x32xf32, #tpu.memory_space<vmem>>, vector<2x8x32xf32>
    %c0_2 = arith.constant 0 : index
    %c0_3 = arith.constant 0 : index
    %1 = vector.load %arg2[%c0_2, %c0_3] : memref<1x32xf32, #tpu.memory_space<vmem>>, vector<1x32xf32>
    %c0_4 = arith.constant 0 : index
    %2 = memref.load %arg3[%c0_4] : memref<1xf32, #tpu.memory_space<smem>>
    %3 = vector.shape_cast %1 : vector<1x32xf32> to vector<1x1x32xf32>
    %4 = vector.broadcast %3 : vector<1x1x32xf32> to vector<2x8x32xf32>
    %5 = arith.mulf %0, %4 : vector<2x8x32xf32>
    %cst = arith.constant dense<0.000000e+00> : vector<2x8xf32>
    %6 = vector.multi_reduction <add>, %5, %cst [2] : vector<2x8x32xf32> to vector<2x8xf32>
    %7 = vector.broadcast %2 : f32 to vector<2x8xf32>
    %8 = arith.addf %6, %7 : vector<2x8xf32>
    %c0_5 = arith.constant 0 : index
    %c0_6 = arith.constant 0 : index
    %9 = vector.load %arg4[%c0_5, %c0_6] : memref<2x8xi32, #tpu.memory_space<vmem>>, vector<2x8xi32>
    %c0_i32 = arith.constant 0 : i32
    %10 = vector.broadcast %c0_i32 : i32 to vector<2x8xi32>
    %11 = arith.cmpi eq, %9, %10 : vector<2x8xi32>
    %cst_7 = arith.constant 0xFF800000 : f32
    %12 = vector.broadcast %cst_7 : f32 to vector<2x8xf32>
    %13 = arith.select %11, %12, %8 : vector<2x8xi1>, vector<2x8xf32>
    %cst_8 = arith.constant dense<0xFF800000> : vector<2xf32>
    %14 = vector.multi_reduction <maximumf>, %13, %cst_8 [1] : vector<2x8xf32> to vector<2xf32>
    %15 = vector.shape_cast %14 : vector<2xf32> to vector<2x1xf32>
    %16 = vector.broadcast %15 : vector<2x1xf32> to vector<2x8xf32>
    %17 = arith.subf %13, %16 : vector<2x8xf32>
    %18 = math.exp %17 : vector<2x8xf32>
    %cst_9 = arith.constant dense<0.000000e+00> : vector<2xf32>
    %19 = vector.multi_reduction <add>, %18, %cst_9 [1] : vector<2x8xf32> to vector<2xf32>
    %20 = vector.shape_cast %19 : vector<2xf32> to vector<2x1xf32>
    %21 = vector.broadcast %20 : vector<2x1xf32> to vector<2x8xf32>
    %22 = arith.divf %18, %21 : vector<2x8xf32>
    %23 = vector.shape_cast %22 : vector<2x8xf32> to vector<2x8x1xf32>
    %24 = vector.broadcast %23 : vector<2x8x1xf32> to vector<2x8x32xf32>
    %25 = arith.mulf %0, %24 : vector<2x8x32xf32>
    %cst_10 = arith.constant dense<0.000000e+00> : vector<2x32xf32>
    %26 = vector.multi_reduction <add>, %25, %cst_10 [1] : vector<2x8x32xf32> to vector<2x32xf32>
    %c0_11 = arith.constant 0 : index
    %c0_12 = arith.constant 0 : index
    %27 = vector.load %arg5[%c0_11, %c0_12] : memref<2x32xf32, #tpu.memory_space<vmem>>, vector<2x32xf32>
    tpu.vector_store %arg5[%c0_11, %c0_12], %26 {strides = array<i32>} : memref<2x32xf32, #tpu.memory_space<vmem>>, vector<2x32xf32>,
    %c0_13 = arith.constant 0 : index
    %c0_14 = arith.constant 0 : index
    %28 = vector.load %arg6[%c0_13, %c0_14] : memref<2x8xf32, #tpu.memory_space<vmem>>, vector<2x8xf32>
    tpu.vector_store %arg6[%c0_13, %c0_14], %22 {strides = array<i32>} : memref<2x8xf32, #tpu.memory_space<vmem>>, vector<2x8xf32>,
    return
  }
  func.func @transform_0(%arg0: i32) -> (i32, i32, i32) {
    %c0_i32 = arith.constant 0 : i32
    %c0_i32_0 = arith.constant 0 : i32
    %c0_i32_1 = arith.constant 0 : i32
    return %arg0, %c0_i32, %c0_i32_0 : i32, i32, i32
  }
  func.func @transform_1(%arg0: i32) -> (i32, i32) {
    %c0_i32 = arith.constant 0 : i32
    %c0_i32_0 = arith.constant 0 : i32
    %c0_i32_1 = arith.constant 0 : i32
    return %c0_i32, %c0_i32_0 : i32, i32
  }
  func.func @transform_2(%arg0: i32) -> i32 {
    %c0_i32 = arith.constant 0 : i32
    %c0_i32_0 = arith.constant 0 : i32
    return %c0_i32 : i32
  }
  func.func @transform_3(%arg0: i32) -> (i32, i32) {
    %c0_i32 = arith.constant 0 : i32
    %c0_i32_0 = arith.constant 0 : i32
    return %arg0, %c0_i32 : i32, i32
  }
  func.func @transform_4(%arg0: i32) -> (i32, i32) {
    %c0_i32 = arith.constant 0 : i32
    %c0_i32_0 = arith.constant 0 : i32
    return %arg0, %c0_i32 : i32, i32
  }
  func.func @transform_5(%arg0: i32) -> (i32, i32) {
    %c0_i32 = arith.constant 0 : i32
    %c0_i32_0 = arith.constant 0 : i32
    return %arg0, %c0_i32 : i32, i32
  }
}

</mosaic_0001>

<bundles_post_ra>
// kernel: tpu_custom_call.1
= control target key start
LH: loop header
LB: loop body
LE: loop exit
PB: predicated region body
PF: predicated region fallthrough
CT: control target
= control target key end

     0   :  { %12 = vsyncpa [#allocation4], 0  ;;  %s324_s0 = inlined_call_operand.hbm [shape: f32[2,8,32], index: 0, kind: input, shape index: {}]   ;;  %s325_s1 = inlined_call_operand.vmem [shape: f32[1,32], index: 1, kind: input, shape index: {}]   ;;  %s326_s2 = inlined_call_operand.<no memory space> [shape: f32[1], index: 2, kind: input, shape index: {}]   ;;  %s327_s3 = inlined_call_operand.vmem [shape: s32[2,8], index: 3, kind: input, shape index: {}]   ;;  %s328_s4 = inlined_call_operand.hbm [shape: f32[2,32], index: 4, kind: output, shape index: {0}]   ;;  %s329_s5 = inlined_call_operand.hbm [shape: f32[2,8], index: 5, kind: output, shape index: {1}]  }
   0x1   :  { %13 = vsyncpa [#allocation5], 0 }
   0x2   :  { %14 = vsyncpa [#allocation8], 0  ;;  %s19_s20 = sshll.u32 %s324_s0, 4  ;;  %s254_s21 = smov [#allocation3]   ;;  %s20_s20 = int_to_ptr.hbm [resolvable:$true] %s19_s20 }
   0x3   :  { %s21_s22 = sshll.u32 %s254_s21, 4  ;;  %s255_s23 = smov 128   ;;  %s22_s22 = int_to_ptr.vmem [resolvable:$true] %s21_s22 }
   0x4   :  { %s256_s24 = smov 8  }
   0x5   :  { %27 = dma.hbm_to_vmem [thread:$0]  %s20_s20, 256, %s22_s22, [#allocation4], %s255_s23, %s255_s23, %s256_s24  }
   0x6   :  { %248 = dma.done.wait [#allocation4], 256  }
   0x7   :  { %249 = vsyncadd [#allocation4], 4294967040  ;;  %v292_v0 = vld [vmem:[#allocation3] sm:$0xff]  ;;  %vm47_vm0 = vcmask 261120   ;;  %v298_v3 = vld [vmem:[#allocation3 + $0x8] sm:$0xff]  ;;  %v61_v8 = vlaneseq  ;;  %v54_v9 = vstv %s326_s2  ;;  %vm65_vm1 = vcmask 1041409  }
   0x8   :  { %v171_v1 = vld [vmem:[%s325_s1] ss:$0 sm:$0xff]  ;;  %vm69_vm3 = vcmask 58368   ;;  %s257_s2 = smov [#allocation7]   ;;  %s149_s6 = sshll.u32 %s329_s5, 4  ;;  %vm128_vm8 = vcmask 254976   ;;  %s150_s6 = int_to_ptr.hbm [resolvable:$true] %s149_s6 }
   0x9   :  { %v45_v2 = vmul.f32 %v171_v1, %v292_v0  ;;  %v46_v5 = vmul.f32 %v171_v1, %v298_v3  ;;  %v62_v10 = vand.u32 127, %v61_v8  ;;  %v57_v13 = vld [vmem:[%s327_s3] sm:$0x3]  ;;  %v96_v25 = vshrl.u32 %v61_v8, 7  ;;  %s147_s3 = sshll.u32 %s257_s2, 4  ;;  %s258_s5 = smov [#allocation6]   ;;  %s148_s3 = int_to_ptr.vmem [resolvable:$true] %s147_s3 }
   0xa   :  { %vm58_vm2 = vcmp.eq.s32.totalorder %v57_v13, 0  ;;  %s136_s7 = sshll.u32 %s258_s5, 4  ;;  %s138_s10 = sshll.u32 %s328_s4, 4  ;;  %s137_s7 = int_to_ptr.vmem [resolvable:$true] %s136_s7  ;;  %s139_s10 = int_to_ptr.hbm [resolvable:$true] %s138_s10 }
   0xb   :  { %v48_v4 = vsel %vm47_vm0, %v45_v2, 0.0  ;;  %v51_v6 = vsel %vm47_vm0, %v46_v5, 0.0  ;;  %169 = vset.pattern.permute.xlu2 %v96_v25  ;;  %170 = vset.pattern.permute.xlu0 %v96_v25 }
   0xc   :  { %49 = vadd.xlane.f32.xlu0 %v48_v4 }
  0x14   :  { %52 = vadd.xlane.f32.xlu0 %v51_v6 }
  0x7f   :  { %v50_v7 = vpop.xlane.xlu0 %49 }
  0x80   :  { %v55_v11 = vadd.f32 %v54_v9, %v50_v7 }
  0x82   :  { %v63_v15 = vperm.slane %v55_v11, %v62_v10 }
  0x87   :  { %v53_v12 = vpop.xlane.xlu0 %52 }
  0x88   :  { %v56_v14 = vadd.f32 %v54_v9, %v53_v12 }
  0x8a   :  { %v64_v16 = vperm.slane %v56_v14, %v62_v10 }
  0x8c   :  { %v66_v17 = vsel %vm65_vm1, %v64_v16, %v63_v15 }
  0x8d   :  { %v68_v18 = vsel %vm58_vm2, -inf, %v66_v17 }
  0x8e   :  { %v70_v19 = vsel %vm69_vm3, %v68_v18, -inf }
  0x8f   :  { %71 = vmax.xlane.f32.xlu1 %v70_v19 }
 0x102   :  { %v72_v20 = vpop.xlane.xlu1 %71 }
 0x103   :  { %v73_v21 = vsub.f32 %v68_v18, %v72_v20 }
 0x105   :  { %v74_v22 = vmul.f32 1.442695, %v73_v21 }
 0x107   :  { %172 = vpow2.f32 %v74_v22 }
 0x10d   :  { %v173_v23 = vpop.eup %172 }
 0x10e   :  { %v76_v24 = vsel %vm69_vm3, %v173_v23, 0.0 }
 0x10f   :  { %77 = vadd.xlane.f32.xlu1 %v76_v24 }
 0x182   :  { %v78_v26 = vpop.xlane.xlu1 %77 }
 0x183   :  { %174 = vrcp.f32 %v78_v26  ;;  %v90_v30 = vand.u32 2147483648, %v78_v26  ;;  %v88_v32 = vand.u32 2147483647, %v78_v26  ;;  %vm84_vm5 = vweird.f32 %v78_v26 }
 0x185   :  { %v91_v34 = vor.u32 1.1754944e-38, %v90_v30  ;;  %vm89_vm7 = vcmp.eq.f32.partialorder %v88_v32, 8.507059e+37 }
 0x189   :  { %v175_v27 = vpop.eup %174 }
 0x18a   :  { %v80_v28 = vmul.f32 %v175_v27, %v78_v26  ;;  %vm85_vm4 = vweird.f32 %v175_v27 }
 0x18b   :  { %vm86_vm6 = vmor %vm84_vm5, %vm85_vm4 }
 0x18c   :  { %v81_v29 = vsub.f32 1.0, %v80_v28 }
 0x18e   :  { %v82_v31 = vmul.f32 %v175_v27, %v81_v29 }
 0x190   :  { %v83_v33 = vadd.f32 %v175_v27, %v82_v31 }
 0x192   :  { %v87_v35 = vsel %vm86_vm6, %v175_v27, %v83_v33 }
 0x193   :  { %v92_v36 = vsel %vm89_vm7, %v91_v34, %v87_v35 }
 0x194   :  { %v93_v37 = vmul.f32 %v173_v23, %v92_v36 }
 0x196   :  { %v94_v38 = vperm.slane %v93_v37, 0  ;;  %130 = vst.msk [vmem:[#allocation7] sm:$0x3] %vm69_vm3, %v93_v37  ;;  %v101_v39 = vperm.slane %v93_v37, 1 }
 0x197   :  { %152 = dma.vmem_to_hbm [thread:$0]  %s148_s3, 32, %s150_s6, [#allocation8]  }
 0x198   :  { %99 = vperm.xlu2 %169, %v94_v38  }
 0x1a0   :  { %106 = vperm.xlu2 %169, %v101_v39  }
 0x1f2   :  { %v100_v40 = vpop.permute.xlu2 %99 }
 0x1f3   :  { %v108_v41 = vmul.f32 %v100_v40, %v292_v0 }
 0x1f5   :  { %v110_v42 = vsel %vm47_vm0, %v108_v41, 0.0 }
 0x1f6   :  { %v111_v43 = vrot.slane %v110_v42, 4 }
 0x1f8   :  { %v112_v44 = vadd.f32 %v111_v43, %v110_v42 }
 0x1fa   :  { %v107_v45 = vpop.permute.xlu2 %106  ;;  %v113_v47 = vrot.slane %v112_v44, 2 }
 0x1fb   :  { %v109_v46 = vmul.f32 %v107_v45, %v298_v3 }
 0x1fc   :  { %v114_v50 = vadd.f32 %v113_v47, %v112_v44 }
 0x1fd   :  { %v117_v48 = vsel %vm47_vm0, %v109_v46, 0.0 }
 0x1fe   :  { %v118_v49 = vrot.slane %v117_v48, 4  ;;  %v115_v53 = vrot.slane %v114_v50, 1 }
 0x200   :  { %v119_v51 = vadd.f32 %v118_v49, %v117_v48  ;;  %v116_v56 = vadd.f32 %v115_v53, %v114_v50 }
 0x202   :  { %v120_v52 = vrot.slane %v119_v51, 2 }
 0x204   :  { %v121_v54 = vadd.f32 %v120_v52, %v119_v51 }
 0x206   :  { %v122_v55 = vrot.slane %v121_v54, 1 }
 0x208   :  { %v123_v57 = vadd.f32 %v122_v55, %v121_v54 }
 0x20a   :  { %v126_v58 = vsel %vm65_vm1, %v123_v57, %v116_v56 }
 0x20b   :  { %129 = vst.msk [vmem:[#allocation6] sm:$0x3] %vm128_vm8, %v126_v58 }
 0x20c   :  { %141 = dma.vmem_to_hbm [thread:$0]  %s137_s7, 32, %s139_s10, [#allocation5]  }
 0x20d   :  { %250 = dma.done.wait [#allocation5], 32  }
 0x20e   :  { %251 = vsyncadd [#allocation5], 4294967264 }
 0x20f   :  { %252 = dma.done.wait [#allocation8], 32  }
 0x210   :  { %253 = vsyncadd [#allocation8], 4294967264 }
 0x211   :  { %161 = vsyncpa [#allocation4], 1 }
 0x212   :  { %162 = vsyncpa [#allocation5], 1 }
 0x213   :  { %163 = vsyncpa [#allocation8], 1 }

</bundles_post_ra>
